<compile_context>
chip_gen: v7x
topology: tpu7x:2x2x1
jax: 0.10.0
libtpu: 0.0.40
codegen_flags: <defaults>
</compile_context>

<pallas_src>
from functools import partial

import numpy as np
import jax
import jax.numpy as jnp
from jax.experimental import pallas as pl
from jax.experimental.pallas import tpu as pltpu


def gat_kernel(si_ref, sj_ref, adj_ref, x_ref, o_ref, *, denom_col):
    """One destination-row tile.

    si_ref : [TM, 1]   slab dtype  a_i(x) for this tile's dst rows
    sj_ref : [1,  Np]  slab dtype  a_j(x) for all src rows (lane-major)
    adj_ref: [TM, Np]  int8        0/1 adjacency (dst rows x src cols)
    x_ref  : [Np, Fp]  bf16        features padded to Fp lanes; column `denom_col` is ones
    o_ref  : [TM, Fp]  f32         relu(softmax-weighted feature sum), lane dense
    """
    # e[i, j] = a_i(x_i) + a_j(x_j), then leaky_relu (slope 0.01).
    e = si_ref[...] + sj_ref[...]                              # [TM, Np]  (VPU, bf16 on v6e/v7x)
    e = jnp.maximum(e, jnp.asarray(0.01, e.dtype) * e)         # leaky_relu

    # Mask non-edges once; masked entries lose the max and (after the clamp) underflow in exp,
    # so no second slab-wide select / multiply is needed.
    adjv = adj_ref[...].astype(e.dtype)                        # int8 -> slab dtype
    e = jnp.where(adjv > 0, e, jnp.asarray(-1e30, e.dtype))

    m = jnp.max(e, axis=-1, keepdims=True)                     # per-dst masked max (XLU)
    z = jnp.maximum(e - m, jnp.asarray(-80.0, e.dtype))        # keep exp argument in range
    p = jnp.exp(z).astype(jnp.bfloat16)                        # off-edge -> ~0 (underflow)

    # Unnormalized spmm on the MXU; the ones-column of x_aug carries the softmax denominator.
    out_un = jnp.dot(p, x_ref[...], preferred_element_type=jnp.float32)   # [TM, Fp] f32
    denom = out_un[:, denom_col:denom_col + 1]                            # [TM, 1]
    inv = pl.reciprocal(jnp.maximum(denom, jnp.float32(1e-30)), approx=True)   # EUP
    # relu(a) / d == relu(a / d) for d > 0: normalize then relu.
    o_ref[...] = jnp.maximum(out_un * inv, 0.0).astype(o_ref.dtype)


def _round_up(v, m):
    return ((v + m - 1) // m) * m


def gat_forward(x, edge_index, w_i, w_j, adj=None, *, tm=None):
    """GAT forward.

    x          : [N, H] f32 node features
    edge_index : [2, E] int32, row 0 = src (edge_index_j), row 1 = dst (edge_index_i)
    w_i, w_j   : [H, 1] f32 attention weights (nn.Linear(hidden, 1, bias=False).weight.T)
    adj        : optional precomputed int8 [N, N] adjacency (adj[dst, src] != 0); pass it
                 for static graphs so the O(N^2) densification is hoisted out of the call.
    """
    N, H = x.shape

    # ---- per-generation tuning --------------------------------------------------------
    kind = ""
    try:
        kind = jax.devices()[0].device_kind.lower()
    except Exception:
        pass
    is_v5 = "v5" in kind
    is_v6 = "v6" in kind
    slab_dtype = jnp.float32 if is_v5 else jnp.bfloat16        # v5e has no bf16 VPU/EUP path
    if is_v5 or is_v6:                                         # 128 MiB VMEM
        budget, vmem_limit, tm_default = 90 << 20, 100 << 20, 256
    else:                                                      # v7x: 64 MiB VMEM per TC
        budget, vmem_limit, tm_default = 36 << 20, 48 << 20, 128

    # ---- prologue: a_i(x), a_j(x) as one thin matmul (keeps 1-lane dots off the kernel MXU)
    s = x @ jnp.concatenate([w_i, w_j], axis=1)                # [N, 2] f32
    s_i = s[:, 0:1].astype(slab_dtype)                         # [N, 1]
    s_j = s[:, 1:2].T.astype(slab_dtype)                       # [1, N] lane-major

    # ---- adjacency mask (int8 halves the only O(N^2) HBM stream) -----------------------
    if adj is None:
        # TODO(synk): a CSR + PrefetchScalarGridSpec path would avoid the dense mask
        #             entirely for very sparse graphs.
        src, dst = edge_index[0], edge_index[1]
        adj = jnp.zeros((N, N), jnp.int8).at[dst, src].set(jnp.int8(1))
    else:
        adj = jnp.asarray(adj, jnp.int8)

    # ---- padding: nodes -> multiple of 128; features -> lane-dense width (+ ones column)
    n_pad = _round_up(N, 128)
    f_pad = max(128, _round_up(H + 1, 128))
    pad_n = n_pad - N
    if pad_n:
        adj = jnp.pad(adj, ((0, pad_n), (0, pad_n)))
        s_i = jnp.pad(s_i, ((0, pad_n), (0, 0)))
        s_j = jnp.pad(s_j, ((0, 0), (0, pad_n)))
    x_rows = jnp.pad(x.astype(jnp.bfloat16), ((0, pad_n), (0, 0)))
    x_aug = jnp.concatenate(
        [x_rows,
         jnp.ones((n_pad, 1), jnp.bfloat16),                   # softmax-denominator column
         jnp.zeros((n_pad, f_pad - H - 1), jnp.bfloat16)],
        axis=1)                                                # [n_pad, f_pad]

    # ---- destination-row tile size ------------------------------------------------------
    slab_b = jnp.dtype(slab_dtype).itemsize

    def working_set(t):
        return (2 * t * n_pad * 1            # adj strip (int8), double-buffered
                + 2 * t * slab_b             # s_i tile
                + 2 * n_pad * slab_b         # s_j row (resident)
                + 2 * n_pad * f_pad * 2      # x_aug (bf16), resident
                + 2 * t * f_pad * 4          # output tile (f32)
                + 3 * t * n_pad * slab_b)    # live [t, N] slab temporaries

    tm = tm_default if tm is None else tm
    tm = max(32, min(int(tm), n_pad))
    tm = 1 << (tm.bit_length() - 1)                            # power of two
    while tm > 32 and (n_pad % tm or working_set(tm) > budget):
        tm //= 2
    if not (is_v5 or is_v6) and n_pad // tm < 2:
        tm = max(32, n_pad // 2)                               # >= 2 blocks so both v7x TCs work
    grid = (n_pad // tm,)

    out = pl.pallas_call(
        partial(gat_kernel, denom_col=H),
        out_shape=jax.ShapeDtypeStruct((n_pad, f_pad), jnp.float32),
        grid=grid,
        in_specs=[
            pl.BlockSpec((tm, 1), lambda i: (i, 0)),           # s_i : per-dst tile
            pl.BlockSpec((1, n_pad), lambda i: (0, 0)),        # s_j : full row, resident
            pl.BlockSpec((tm, n_pad), lambda i: (i, 0)),       # adj : streamed int8 row strip
            pl.BlockSpec((n_pad, f_pad), lambda i: (0, 0)),    # x   : full block, resident
        ],
        out_specs=pl.BlockSpec((tm, f_pad), lambda i: (i, 0)),
        compiler_params=pltpu.CompilerParams(
            dimension_semantics=("parallel",),
            vmem_limit_bytes=vmem_limit,
        ),
    )(s_i, s_j, adj, x_aug)

    return out[:N, :H].astype(x.dtype)


def gat_reference(x, edge_index, w_i, w_j):
    """Pure-JAX edge-based reference (mirrors the PyTorch module literally)."""
    N = x.shape[0]
    src, dst = edge_index[0], edge_index[1]
    s_i = (x @ w_i)[:, 0]
    s_j = (x @ w_j)[:, 0]
    e = s_i[dst] + s_j[src]
    e = jnp.where(e > 0, e, 0.01 * e)
    m = jax.ops.segment_max(e, dst, num_segments=N)
    p = jnp.exp(e - m[dst])
    denom = jax.ops.segment_sum(p, dst, num_segments=N)
    alpha = p / denom[dst]
    out = jax.ops.segment_sum(alpha[:, None] * x[src], dst, num_segments=N)
    return jnp.maximum(out, 0.0)


if __name__ == "__main__":
    key = jax.random.PRNGKey(0)
    N, H = 200, 32   # non-multiple of 128 exercises the padding path

    k_x, k_wi, k_wj, k_wr, k_adj = jax.random.split(key, 5)
    x = jax.random.normal(k_x, (N, H), dtype=jnp.float32)

    # nn.Linear(hidden, 1, bias=False) weights, stored pre-transposed as [H, 1]
    w_i = jax.random.normal(k_wi, (H, 1), dtype=jnp.float32) * 0.1
    w_j = jax.random.normal(k_wj, (H, 1), dtype=jnp.float32) * 0.1
    w_r = jax.random.normal(k_wr, (H, 1), dtype=jnp.float32) * 0.1  # a_r: unused in forward

    # Deterministic simple graph; guarantee every dst has >= 1 incoming edge
    # (the literal reference divides by the per-dst softmax denominator).
    mask = np.array(jax.random.bernoulli(k_adj, 0.15, (N, N)))      # rows = dst, cols = src
    empty_rows = np.where(~mask.any(axis=1))[0]
    mask[empty_rows, empty_rows] = True
    dst_np, src_np = np.nonzero(mask)
    edge_index = jnp.stack(
        [jnp.asarray(src_np, jnp.int32), jnp.asarray(dst_np, jnp.int32)], axis=0
    )  # [2, E]: row 0 = edge_index_j (src), row 1 = edge_index_i (dst)

    # Host-built int8 adjacency (densification hoisted out of the per-step call).
    adj_host = jnp.asarray(mask.astype(np.int8))

    out = gat_forward(x, edge_index, w_i, w_j, adj=adj_host)
    out = jax.block_until_ready(out)

    ref = gat_reference(x, edge_index, w_i, w_j)
    # Looser tolerance: bf16 slab math (on v6e/v7x), bf16 MXU inputs, approx reciprocal.
    np.testing.assert_allclose(np.array(out), np.array(ref), rtol=2e-2, atol=2e-2)

    print("KERNEL_OK")
</pallas_src>

<mosaic_0001>
module attributes {stable_mosaic.version = 11 : i64} {
  func.func @gat_kernel(%arg0: i32, %arg1: memref<128x1xbf16, #tpu.memory_space<vmem>>, %arg2: memref<1x256xbf16, #tpu.memory_space<vmem>>, %arg3: memref<128x256xi8, #tpu.memory_space<vmem>>, %arg4: memref<256x128xbf16, #tpu.memory_space<vmem>>, %arg5: memref<128x128xf32, #tpu.memory_space<vmem>>) attributes {dimension_semantics = [#tpu.dimension_semantics<parallel>], iteration_bounds = array<i64: 2>, scalar_prefetch = 0 : i64, scratch_operands = 0 : i64, tpu.core_type = #tpu.core_type<tc>, window_params = [{transform_indices = @transform_0, window_bounds = array<i64: 128, 1>}, {pipeline_mode = #tpu.pipeline_mode<synchronous>, transform_indices = @transform_1, window_bounds = array<i64: 1, 256>}, {transform_indices = @transform_2, window_bounds = array<i64: 128, 256>}, {pipeline_mode = #tpu.pipeline_mode<synchronous>, transform_indices = @transform_3, window_bounds = array<i64: 256, 128>}, {transform_indices = @transform_4, window_bounds = array<i64: 128, 128>}]} {
    %c0 = arith.constant 0 : index
    %c0_0 = arith.constant 0 : index
    %0 = vector.load %arg1[%c0, %c0_0] : memref<128x1xbf16, #tpu.memory_space<vmem>>, vector<128x1xbf16>
    %c0_1 = arith.constant 0 : index
    %c0_2 = arith.constant 0 : index
    %1 = vector.load %arg2[%c0_1, %c0_2] : memref<1x256xbf16, #tpu.memory_space<vmem>>, vector<1x256xbf16>
    %2 = vector.broadcast %0 : vector<128x1xbf16> to vector<128x256xbf16>
    %3 = vector.broadcast %1 : vector<1x256xbf16> to vector<128x256xbf16>
    %4 = arith.addf %2, %3 : vector<128x256xbf16>
    %cst = arith.constant 1.000980e-02 : bf16
    %5 = vector.broadcast %cst : bf16 to vector<128x256xbf16>
    %6 = arith.mulf %5, %4 : vector<128x256xbf16>
    %7 = arith.maximumf %4, %6 : vector<128x256xbf16>
    %c0_3 = arith.constant 0 : index
    %c0_4 = arith.constant 0 : index
    %8 = vector.load %arg3[%c0_3, %c0_4] : memref<128x256xi8, #tpu.memory_space<vmem>>, vector<128x256xi8>
    %9 = arith.sitofp %8 : vector<128x256xi8> to vector<128x256xbf16>
    %cst_5 = arith.constant 0.000000e+00 : bf16
    %10 = vector.broadcast %cst_5 : bf16 to vector<128x256xbf16>
    %11 = arith.cmpf ogt, %9, %10 : vector<128x256xbf16>
    %cst_6 = arith.constant -1.000260e+30 : bf16
    %12 = vector.broadcast %cst_6 : bf16 to vector<128x256xbf16>
    %13 = arith.select %11, %7, %12 : vector<128x256xi1>, vector<128x256xbf16>
    %cst_7 = arith.constant dense<0xFF80> : vector<128xbf16>
    %14 = vector.multi_reduction <maximumf>, %13, %cst_7 [1] : vector<128x256xbf16> to vector<128xbf16>
    %15 = vector.shape_cast %14 : vector<128xbf16> to vector<128x1xbf16>
    %16 = vector.broadcast %15 : vector<128x1xbf16> to vector<128x256xbf16>
    %17 = arith.subf %13, %16 : vector<128x256xbf16>
    %cst_8 = arith.constant -8.000000e+01 : bf16
    %18 = vector.broadcast %cst_8 : bf16 to vector<128x256xbf16>
    %19 = arith.maximumf %17, %18 : vector<128x256xbf16>
    %20 = math.exp %19 : vector<128x256xbf16>
    %c0_9 = arith.constant 0 : index
    %c0_10 = arith.constant 0 : index
    %21 = vector.load %arg4[%c0_9, %c0_10] : memref<256x128xbf16, #tpu.memory_space<vmem>>, vector<256x128xbf16>
    %cst_11 = arith.constant dense<0.000000e+00> : vector<128x128xf32>
    %22 = tpu.matmul %20, %21, %cst_11 {dimension_numbers = #tpu.dot_dimension_numbers<[1], [0], [0], [1], [0, 0, 1, 1], [], []>} : vector<128x256xbf16>, vector<256x128xbf16>, vector<128x128xf32> -> vector<128x128xf32>
    %23 = vector.extract_strided_slice %22 {offsets = [0, 32], sizes = [128, 1], strides = [1, 1]} : vector<128x128xf32> to vector<128x1xf32>
    %cst_12 = arith.constant 1.000000e-30 : f32
    %24 = vector.broadcast %cst_12 : f32 to vector<128x1xf32>
    %25 = arith.maximumf %23, %24 : vector<128x1xf32>
    %26 = tpu.reciprocal %25 {approx = true} : vector<128x1xf32> -> vector<128x1xf32>
    %27 = vector.broadcast %26 : vector<128x1xf32> to vector<128x128xf32>
    %28 = arith.mulf %22, %27 : vector<128x128xf32>
    %cst_13 = arith.constant 0.000000e+00 : f32
    %29 = vector.broadcast %cst_13 : f32 to vector<128x128xf32>
    %30 = arith.maximumf %28, %29 : vector<128x128xf32>
    %c0_14 = arith.constant 0 : index
    %c0_15 = arith.constant 0 : index
    %31 = vector.load %arg5[%c0_14, %c0_15] : memref<128x128xf32, #tpu.memory_space<vmem>>, vector<128x128xf32>
    tpu.vector_store %arg5[%c0_14, %c0_15], %30 {strides = array<i32>} : memref<128x128xf32, #tpu.memory_space<vmem>>, vector<128x128xf32>,
    return
  }
  func.func @transform_0(%arg0: i32) -> (i32, i32) {
    %c0_i32 = arith.constant 0 : i32
    %c0_i32_0 = arith.constant 0 : i32
    return %arg0, %c0_i32 : i32, i32
  }
  func.func @transform_1(%arg0: i32) -> (i32, i32) {
    %c0_i32 = arith.constant 0 : i32
    %c0_i32_0 = arith.constant 0 : i32
    %c0_i32_1 = arith.constant 0 : i32
    return %c0_i32, %c0_i32_0 : i32, i32
  }
  func.func @transform_2(%arg0: i32) -> (i32, i32) {
    %c0_i32 = arith.constant 0 : i32
    %c0_i32_0 = arith.constant 0 : i32
    return %arg0, %c0_i32 : i32, i32
  }
  func.func @transform_3(%arg0: i32) -> (i32, i32) {
    %c0_i32 = arith.constant 0 : i32
    %c0_i32_0 = arith.constant 0 : i32
    %c0_i32_1 = arith.constant 0 : i32
    return %c0_i32, %c0_i32_0 : i32, i32
  }
  func.func @transform_4(%arg0: i32) -> (i32, i32) {
    %c0_i32 = arith.constant 0 : i32
    %c0_i32_0 = arith.constant 0 : i32
    return %arg0, %c0_i32 : i32, i32
  }
}

</mosaic_0001>

<bundles_post_ra>
// kernel: tpu_custom_call.1
= control target key start
LH: loop header
LB: loop body
LE: loop exit
PB: predicated region body
PF: predicated region fallthrough
CT: control target
= control target key end

     0   :  { %9 = vsyncpa [#allocation3], 0  ;;  %s2121_s0 = inlined_call_operand.vmem [shape: bf16[256,1], index: 0, kind: input, shape index: {}]   ;;  %s2122_s1 = inlined_call_operand.vmem [shape: bf16[1,256], index: 1, kind: input, shape index: {}]   ;;  %s2123_s2 = inlined_call_operand.vmem [shape: s8[256,256], index: 2, kind: input, shape index: {}]   ;;  %s2124_s3 = inlined_call_operand.hbm [shape: bf16[256,128], index: 3, kind: input, shape index: {}]   ;;  %s2125_s4 = inlined_call_operand.hbm [shape: f32[256,128], index: 4, kind: output, shape index: {}]  }
   0x1   :  { %10 = vsyncpa [#allocation4], 0 }
   0x2   :  { %12 = vsyncpa [#allocation4 + $0x1], 0  ;;  %s1676_s15 = smov 0   ;;  %s1678_s16 = smov 0  }
   0x3   :  { %s1680_s17 = smov 0   ;;  %s1682_s18 = smov 0  }
   0x4 LB: > { %s1697_s19 = sadd.s32 4294967295, %s1638_s18   ;;  %s1268_s20 = sadd.s32 4294967294, %s1638_s18   ;;  %s1638_s18 = sphi %s1682_s18, %s2165_s18   ;;  %s1634_s17 = sphi %s1680_s17, %s2164_s17   ;;  %s1630_s16 = sphi %s1678_s16, %s2163_s16   ;;  %s1626_s15 = sphi %s1676_s15, %s2162_s15  }
   0x5   : > { %s1701_s21 = sadd.s32 1, %s1638_s18   ;;  %s119_s22 = sadd.s32 1, %s1634_s17 }
   0x6   : > { %s116_s23 = ssub.s32 %s1638_s18, %s1701_s21  ;;  %p129_p0 = scmp.ne.s32.totalorder %s1634_s17, %s1630_s16 }
   0x7   : > { %p117_p1 = scmp.eq.s32.totalorder %s116_s23, 0  ;;  %p130_p2 = scmp.eq.s32.totalorder %s1697_s19, 1 }
   0x8   : > { %p135_p3 = scmp.ne.s32.totalorder %s1630_s16, %s1626_s15  ;;  %p136_p4 = scmp.eq.s32.totalorder %s1268_s20, 1 }
   0x9   : > { %s1712_s24 = scalar_select %p117_p1, %s1634_s17, %s119_s22  }
   0xa   : > { %p1714_p5 = por %p130_p2, %p129_p0  ;;  %p1718_p6 = por %p136_p4, %p135_p3 }
   0xb   : > { %p1269_p7 = scmp.ge.s32.totalorder %s1638_s18, 1  ;;  %p143_p8 = scmp.lt.s32.totalorder %s1638_s18, 3 }
   0xc   : > { %s2129_s25 = scalar_select %p1714_p5, 1, 0 }
   0xd   : > { %s2130_s26 = scalar_select %p1718_p6, 1, 0 }
   0xe   : > { %p2126_p9 = scmp.eq.s32.totalorder %s1697_s19, 0  ;;  %p1725_p10 = pnand %p1269_p7, %p143_p8 }
   0xf   : > { %s1640_s28 = smov [#allocation2]   ;;  %s1544_s7 = scalar_lea.hbm %s2124_s3, 2048 }
  0x10   : > { %s2131_s27 = scalar_select %p1725_p10, 1, 0 }
  0x11   : > { %s158_s29 = sshll.u32 %s1640_s28, 4  ;;  %p1407_p11 = pneg %p1725_p10  ;;  %s159_s29 = int_to_ptr.vmem [resolvable:$true] %s158_s29 }
  0x12   : > { %p1545_p13 = scmp.ne.s32.totalorder %s2124_s3, %s1544_s7  ;;  %p1551_p3 = scmp.lt.u32.totalorder %s1544_s7, %s2124_s3 }
  0x13   : > { %p1733_p12 = pnand %p2126_p9, %p1407_p11 }
  0x15   : > { %p1546_p0 = pneg %p1733_p12 }
  0x17   : > { %p1547_p1 = pnand %p1546_p0, %p1545_p13 }
  0x19   : > { %p1548_p2 = pneg %p1547_p1 }
  0x1b   : > { %p1553_p4 = pnand %p1551_p3, %p1548_p2 }
  0x1d   : > { %1556 = shalt.err (!%p1553_p4)
}
  0x1e   : > { %s1557_s12 = scalar_lea.vmem %s159_s29, 2048  ;;  %p1565_p9 = scmp.lt.s32.totalorder %s159_s29, %s159_s29 }
  0x1f   : > { %p1558_p7 = scmp.ne.s32.totalorder %s159_s29, %s1557_s12  ;;  %p1566_p6 = scmp.lt.s32.totalorder %s1557_s12, %s1557_s12 }
  0x21   : > { %p1560_p8 = pnand %p1558_p7, %p1546_p0  ;;  %p1567_p5 = por %p1566_p6, %p1565_p9 }
  0x23   : > { %p1561_p11 = pneg %p1560_p8 }
  0x25   : > { %p1568_p10 = pnand %p1567_p5, %p1561_p11 }
  0x27   : > { %1571 = shalt.err (!%p1568_p10)
}
  0x28   : > { %s1641_s13 = smov 64   ;;  %s1642_s14 = smov 4  }
  0x29   : > { %1410 = dma.hbm_to_vmem [thread:$0]  (!%p1733_p12), %s2124_s3, 2048, %s159_s29, [#allocation3], %s1641_s13, %s1641_s13, %s1642_s14  }
  0x2a   : > { %p2133_p13 = scmp.ne.s32.totalorder %s2131_s27, 0 }
  0x2b   : > { %p2134_p1 = scmp.eq.s32.totalorder (!%p2133_p13), %s1697_s19, 0 }
  0x2c   : > { %193 = sbr.rel (%p2133_p13) target bundleno = 788 (0x314), region = 36 }
  0x33   : > { %1617 = dma.done.wait (%p2134_p1), [#allocation3], 2048   ;;  %p2135_p0 = pmov %p2134_p1 }
  0x34   : > { %s1275_s23 = sshll.u32 %s1697_s19, 4  ;;  %v1643_v0 = vmov 0   ;;  %v1464_v17 = vld [vmem:[#allocation2 + $0x40] sm:$0xff]   ;;  %v1466_v19 = vld [vmem:[#allocation2 + $0x48] sm:$0xff]   ;;  %v1468_v21 = vld [vmem:[#allocation2 + $0x50] sm:$0xff]   ;;  %v268_v24 = vlaneseq  ;;  %s1277_s7 = sshll.u32 %s1697_s19, 2 }
  0x35   : > { %1619 = vsyncadd (%p2135_p0), [#allocation3], 4294965248  ;;  %1461 = vset.pattern.permute.xlu1 %v1643_v0  ;;  %1460 = vset.pattern.permute.xlu0 %v1643_v0  ;;  %p226_p5 = scmp.lt.s32.totalorder %s1275_s23, 31  ;;  %v1465_v18 = vld [vmem:[#allocation2] sm:$0xff]   ;;  %v1467_v20 = vld [vmem:[#allocation2 + $0x8] sm:$0xff]   ;;  %p232_p6 = scmp.lt.s32.totalorder %s1277_s7, 7 }
  0x36   : > { %1321 = vmatprep.subr.bf16.mxu0 %v1464_v17  ;;  %1385 = vmatprep.subr.bf16.mxu1 %v1464_v17  ;;  %v1469_v22 = vld [vmem:[#allocation2 + $0x10] sm:$0xff]   ;;  %v1470_v23 = vld [vmem:[#allocation2 + $0x58] sm:$0xff]   ;;  %v1644_v25 = vmov 1966171168   ;;  %v269_v27 = vshrl.u32 %v268_v24, 7  ;;  %s222_s12 = sand.u32 1, %s1630_s16  }
  0x37   : > { %s2167_s23 = smov (!%p226_p5, %s1275_s23), 31  ;;  %1322 = vmatpush3.bf16.msra.mxu0 %v1465_v18  ;;  %1393 = vmatpush3.bf16.msra.mxu1 %v1465_v18  ;;  %v462_v26 = vunpack.c.l.s4 %v1644_v25  ;;  %v1280_v29 = vld.sshfl [vmem:[%s2122_s1] sm:$0x11 pattern:$0x75316420]  ;;  %s2169_s7 = smov (!%p232_p6, %s1277_s7), 7 }
  0x38   : > { %s1276_s28 = sshll.u32 %s2167_s23, 2  ;;  %1323 = vmatprep.subr.bf16.mxu0 %v1466_v19  ;;  %1386 = vmatprep.subr.bf16.mxu1 %v1466_v19  ;;  %v460_v30 = vcombine.high %v1280_v29, %v1280_v29  ;;  %v1645_v34 = vmov 839922192   ;;  %v480_v37 = vsub.s32 0, %v269_v27  ;;  %s1319_s8 = sshll.u32 %s2169_s7, 4 }
  0x39   : > { %s229_s29 = scalar_lea.vmem %s2121_s0, %s1276_s28  ;;  %v463_v28 = vunpack.c.0.s8 %v462_v26  ;;  %v266_v35 = vunpack.c.l.s4 %v1645_v34  ;;  %s1772_s11 = scalar_lea.vmem %s2123_s2, %s1319_s8 }
  0x3a   : > { %v251_v1 = vld [vmem:[%s229_s29 + $0x20] sm:$0xf]  ;;  %v252_v3 = vld [vmem:[%s229_s29 + $0x24] sm:$0xf]  ;;  %v246_v5 = vld [vmem:[%s229_s29 + $0xc] sm:$0xf] }
  0x3b   : > { %v243_v2 = vld [vmem:[%s229_s29] sm:$0xf]  ;;  %358 = vperm.xlu1 %1461, %v251_v1   ;;  %v244_v4 = vld [vmem:[%s229_s29 + $0x4] sm:$0xf]  ;;  %v245_v6 = vld [vmem:[%s229_s29 + $0x8] sm:$0xf]  ;;  %1324 = vmatpush3.bf16.msra.mxu0 %v1467_v20  ;;  %v466_v31 = vsub.s32 %v463_v28, %v269_v27  ;;  %v267_v39 = vunpack.c.0.s8 %v266_v35 }
  0x3c   : > { %262 = vperm.xlu0 %1460, %v243_v2   ;;  %v254_v7 = vld [vmem:[%s229_s29 + $0x2c] sm:$0xf]  ;;  %v253_v8 = vld [vmem:[%s229_s29 + $0x28] sm:$0xf]  ;;  %v248_v9 = vld [vmem:[%s229_s29 + $0x14] sm:$0xf]  ;;  %1394 = vmatpush3.bf16.msra.mxu1 %v1467_v20 }
  0x3d   : > { %v247_v10 = vld [vmem:[%s229_s29 + $0x10] sm:$0xf]  ;;  %v256_v11 = vld [vmem:[%s229_s29 + $0x34] sm:$0xf]  ;;  %v250_v13 = vld [vmem:[%s229_s29 + $0x1c] sm:$0xf]  ;;  %1325 = vmatprep.subr.bf16.mxu0 %v1468_v21  ;;  %1387 = vmatprep.subr.bf16.mxu1 %v1468_v21  ;;  %v467_v32 = vrot.slane %v1280_v29, %v466_v31  ;;  %v474_v33 = vrot.slane %v460_v30, %v466_v31  ;;  %v1767_v42 = vsub.s32 %v267_v39, %v269_v27 }
  0x3e   : > { %v255_v12 = vld [vmem:[%s229_s29 + $0x30] sm:$0xf]  ;;  %v249_v14 = vld [vmem:[%s229_s29 + $0x18] sm:$0xf]  ;;  %v258_v15 = vld [vmem:[%s229_s29 + $0x3c] sm:$0xf] }
  0x3f   : > { %370 = vperm.xlu1 %1461, %v252_v3   ;;  %v257_v16 = vld [vmem:[%s229_s29 + $0x38] sm:$0xf]  ;;  %1326 = vmatpush3.bf16.msra.mxu0 %v1469_v22  ;;  %v476_v36 = vpack.i.b16 %v467_v32, %v467_v32  ;;  %v483_v38 = vpack.i.b16 %v474_v33, %v474_v33  ;;  %v547_v48 = vld [vmem:[%s1772_s11 + $0x20] sm:$0xff]  ;;  %v1780_v49 = vld [vmem:[%s1772_s11 + $0x28] sm:$0xff]  ;;  %s1274_s13 = sshll.u32 %s222_s12, 7  ;;  %s1320_s20 = sshll.u32 %s1697_s19, 11 }
  0x40   : > { %274 = vperm.xlu0 %1460, %v244_v4   ;;  %1395 = vmatpush3.bf16.msra.mxu1 %v1469_v22  ;;  %v543_v50 = vld [vmem:[%s1772_s11] sm:$0xff]  ;;  %v544_v51 = vld [vmem:[%s1772_s11 + $0x8] sm:$0xff]  ;;  %v559_v58 = vunpack.c.l.s8.bf16 %v547_v48  ;;  %v560_v59 = vunpack.c.l.s8.bf16 %v1780_v49  ;;  %v562_v24 = vunpack.c.h.s8.bf16 %v1780_v49  ;;  %s2037_s14 = scalar_lea.vmem [#allocation5], %s1274_s13  ;;  %s2073_s30 = scalar_lea.hbm %s2125_s4, %s1320_s20 }
  0x41   : > { %1327 = vmatprep.subr.bf16.mxu0 %v1470_v23  ;;  %1388 = vmatprep.subr.bf16.mxu1 %v1470_v23  ;;  %v481_v40 = vrot.slane %v476_v36, %v480_v37  ;;  %v488_v41 = vrot.slane %v483_v38, %v480_v37  ;;  %v551_v60 = vunpack.c.l.s8.bf16 %v543_v50  ;;  %v552_v61 = vunpack.c.l.s8.bf16 %v544_v51  ;;  %s1182_s22 = sshll.u32 %s2037_s14, 4  ;;  %s2080_s5 = scalar_lea.sflag [#allocation4], %s222_s12  ;;  %s2075_s22 = int_to_ptr.vmem [resolvable:$true] %s1182_s22 }
  0x42   : > { %v553_v0 = vunpack.c.h.s8.bf16 %v543_v50  ;;  %vm1793_vm0 = vcmp.gt.bf16.partialorder %v559_v58, 0  ;;  %vm1797_vm1 = vcmp.gt.bf16.partialorder %v560_v59, 0  ;;  %v1843_v50 = vld [vmem:[%s1772_s11 + $0x10] sm:$0xff]  ;;  %vm1854_vm7 = vcmp.gt.bf16.partialorder %v562_v24, 0  ;;  %s1572_s19 = scalar_lea.vmem %s2075_s22, 2048  ;;  %p2160_p10 = scmp.ne.s32.totalorder %s2129_s25, 0 }
  0x43   : > { %298 = vperm.xlu1 %1461, %v246_v5   ;;  %v1774_v43 = vcombine.low %v481_v40, %v488_v41  ;;  %v554_v5 = vunpack.c.h.s8.bf16 %v544_v51  ;;  %vm1801_vm2 = vcmp.gt.bf16.partialorder %v551_v60, 0  ;;  %vm1805_vm3 = vcmp.gt.bf16.partialorder %v552_v61, 0  ;;  %v1846_v51 = vld [vmem:[%s1772_s11 + $0x18] sm:$0xff]  ;;  %v1861_v60 = vld [vmem:[%s1772_s11 + $0x30] sm:$0xff]  ;;  %p1573_p9 = scmp.ne.s32.totalorder %s2075_s22, %s1572_s19  ;;  %s1648_s29 = smov [#allocation5]  }
  0x44   : > { %286 = vperm.xlu0 %1460, %v245_v6   ;;  %v561_v6 = vunpack.c.h.s8.bf16 %v547_v48  ;;  %vm1811_vm4 = vcmp.gt.bf16.partialorder %v553_v0, 0  ;;  %s1576_s27 = sshll.u32 %s1648_s29, 4  ;;  %s1577_s27 = int_to_ptr.vmem [resolvable:$false] %s1576_s27 }
  0x45   : > { %vm1818_vm5 = vcmp.gt.bf16.partialorder %v554_v5, 0  ;;  %p1574_p12 = pnand %p1573_p9, %p2160_p10  ;;  %s1578_s6 = scalar_lea.vmem %s1577_s27, 4096 }
  0x46   : > { %vm1822_vm6 = vcmp.gt.bf16.partialorder %v561_v6, 0  ;;  %p1579_p3 = scmp.lt.s32.totalorder %s2075_s22, %s1577_s27  ;;  %p1580_p4 = scmp.lt.s32.totalorder %s1578_s6, %s1572_s19 }
  0x47   : > { %394 = vperm.xlu1 %1461, %v254_v7   ;;  %p1575_p2 = pneg %p1574_p12 }
  0x48   : > { %382 = vperm.xlu0 %1460, %v253_v8   ;;  %p1581_p7 = por %p1580_p4, %p1579_p3 }
  0x4a   : > { %p1582_p8 = pnand %p1581_p7, %p1575_p2 }
  0x4b   : > { %322 = vperm.xlu1 %1461, %v248_v9  }
  0x4c   : > { %310 = vperm.xlu0 %1460, %v247_v10  }
  0x4f   : > { %418 = vperm.xlu1 %1461, %v256_v11   ;;  %v563_v11 = vunpack.c.l.s8.bf16 %v1861_v60 }
  0x50   : > { %406 = vperm.xlu0 %1460, %v255_v12  }
  0x51   : > { %vm1905_vm10 = vcmp.gt.bf16.partialorder %v563_v11, 0  ;;  %v1471_v11 = vld [vmem:[#allocation2 + $0x18] sm:$0xff]  }
  0x52   : > { %1328 = vmatpush3.bf16.msra.mxu0 %v1471_v11  ;;  %1396 = vmatpush3.bf16.msra.mxu1 %v1471_v11 }
  0x53   : > { %346 = vperm.xlu1 %1461, %v250_v13  }
  0x54   : > { %334 = vperm.xlu0 %1460, %v249_v14  }
  0x57   : > { %442 = vperm.xlu1 %1461, %v258_v15  }
  0x58   : > { %430 = vperm.xlu0 %1460, %v257_v16  }
  0xba   : > { %v359_v44 = vpop.permute.xlu1 %358 }
  0xbb   : > { %v263_v45 = vpop.permute.xlu0 %262  ;;  %v367_v46 = vrot.slane %v359_v44, %v1767_v42 }
  0xbc   : > { %v271_v47 = vrot.slane %v263_v45, %v1767_v42 }
  0xbd   : > { %v503_v52 = vadd.bf16 %v1774_v43, %v367_v46 }
  0xbe   : > { %v495_v53 = vadd.bf16 %v1774_v43, %v271_v47  ;;  %v371_v54 = vpop.permute.xlu1 %370 }
  0xbf   : > { %v275_v55 = vpop.permute.xlu0 %274  ;;  %v379_v56 = vrot.slane %v371_v54, %v1767_v42  ;;  %v519_v1 = vmul.bf16 1009007652, %v503_v52 }
  0xc0   : > { %v283_v57 = vrot.slane %v275_v55, %v1767_v42  ;;  %v511_v2 = vmul.bf16 1009007652, %v495_v53 }
  0xc1   : > { %v504_v62 = vadd.bf16 %v1774_v43, %v379_v56  ;;  %v535_v19 = vmax.bf16 %v519_v1, %v503_v52  ;;  %v555_v1 = vunpack.c.l.s8.bf16 %v1843_v50 }
  0xc2   : > { %v496_v63 = vadd.bf16 %v1774_v43, %v283_v57  ;;  %v299_v3 = vpop.permute.xlu1 %298  ;;  %v527_v20 = vmax.bf16 %v511_v2, %v495_v53  ;;  %v556_v2 = vunpack.c.l.s8.bf16 %v1846_v51 }
  0xc3   : > { %v287_v4 = vpop.permute.xlu0 %286  ;;  %v520_v7 = vmul.bf16 1009007652, %v504_v62  ;;  %v307_v9 = vrot.slane %v299_v3, %v1767_v42  ;;  %vm1893_vm8 = vcmp.gt.bf16.partialorder %v555_v1, 0  ;;  %v557_v1 = vunpack.c.h.s8.bf16 %v1843_v50 }
  0xc4   : > { %v512_v8 = vmul.bf16 1009007652, %v496_v63  ;;  %v295_v10 = vrot.slane %v287_v4, %v1767_v42  ;;  %vm1897_vm9 = vcmp.gt.bf16.partialorder %v556_v2, 0  ;;  %v558_v2 = vunpack.c.h.s8.bf16 %v1846_v51 }
  0xc5   : > { %v536_v15 = vmax.bf16 %v520_v7, %v504_v62  ;;  %v498_v17 = vadd.bf16 %v1774_v43, %v307_v9  ;;  %v550_v7 = vld [vmem:[%s1772_s11 + $0x38] sm:$0xff]  ;;  %vm573_vm14 = vcmp.gt.bf16.partialorder %v557_v1, 0 }
  0xc6   : > { %v528_v16 = vmax.bf16 %v512_v8, %v496_v63  ;;  %v497_v18 = vadd.bf16 %v1774_v43, %v295_v10  ;;  %v395_v21 = vpop.permute.xlu1 %394  ;;  %vm574_vm15 = vcmp.gt.bf16.partialorder %v558_v2, 0 }
  0xc7   : > { %v383_v22 = vpop.permute.xlu0 %382  ;;  %v514_v25 = vmul.bf16 1009007652, %v498_v17  ;;  %v403_v27 = vrot.slane %v395_v21, %v1767_v42  ;;  %v1290_v31 = vcombine.low %v535_v19, %v536_v15  ;;  %v1291_v32 = vcombine.high %v535_v19, %v536_v15 }
  0xc8   : > { %v513_v26 = vmul.bf16 1009007652, %v497_v18  ;;  %v391_v28 = vrot.slane %v383_v22, %v1767_v42  ;;  %v1282_v33 = vcombine.low %v527_v20, %v528_v16  ;;  %v1283_v34 = vcombine.high %v527_v20, %v528_v16 }
  0xc9   : > { %v530_v35 = vmax.bf16 %v514_v25, %v498_v17  ;;  %v506_v37 = vadd.bf16 %v1774_v43, %v403_v27  ;;  %v1830_v41 = vsel %vm1793_vm0, %v1290_v31, 4048220490  ;;  %v1834_v44 = vsel %vm1797_vm1, %v1291_v32, 4048220490 }
  0xca   : > { %v529_v36 = vmax.bf16 %v513_v26, %v497_v18  ;;  %v505_v38 = vadd.bf16 %v1774_v43, %v391_v28  ;;  %v323_v39 = vpop.permute.xlu1 %322  ;;  %v1838_v45 = vsel %vm1801_vm2, %v1282_v33, 4048220490  ;;  %v691_v52 = vmax.bf16 %v1834_v44, %v1830_v41 }
  0xcb   : > { %v311_v40 = vpop.permute.xlu0 %310  ;;  %v522_v46 = vmul.bf16 1009007652, %v506_v37  ;;  %v331_v48 = vrot.slane %v323_v39, %v1767_v42  ;;  %v1852_v53 = vsel %vm1805_vm3, %v1283_v34, 4048220490  ;;  %v564_v21 = vunpack.c.l.s8.bf16 %v550_v7 }
  0xcc   : > { %v521_v47 = vmul.bf16 1009007652, %v505_v38  ;;  %v319_v49 = vrot.slane %v311_v40, %v1767_v42  ;;  %v1284_v54 = vcombine.low %v529_v36, %v530_v35  ;;  %692 = vmax.xlane.bf16.xlu1 %v691_v52  ;;  %v679_v61 = vmax.bf16 %v1852_v53, %v1838_v45 }
  0xcd   : > { %v538_v56 = vmax.bf16 %v522_v46, %v506_v37  ;;  %v500_v58 = vadd.bf16 %v1774_v43, %v331_v48  ;;  %v1285_v0 = vcombine.high %v529_v36, %v530_v35  ;;  %vm1909_vm11 = vcmp.gt.bf16.partialorder %v564_v21, 0  ;;  %v1474_v21 = vld [vmem:[#allocation2 + $0x68] sm:$0xff]  }
  0xce   : > { %v537_v57 = vmax.bf16 %v521_v47, %v505_v38  ;;  %v499_v59 = vadd.bf16 %v1774_v43, %v319_v49  ;;  %v419_v62 = vpop.permute.xlu1 %418  ;;  %680 = vmax.xlane.bf16.xlu0 %v679_v61  ;;  %v1872_v8 = vsel %vm1811_vm4, %v1284_v54, 4048220490  ;;  %v565_v54 = vunpack.c.h.s8.bf16 %v1861_v60 }
  0xcf   : > { %v407_v63 = vpop.permute.xlu0 %406  ;;  %v516_v3 = vmul.bf16 1009007652, %v500_v58  ;;  %v427_v5 = vrot.slane %v419_v62, %v1767_v42  ;;  %v1879_v18 = vsel %vm1818_vm5, %v1285_v0, 4048220490 }
  0xd0   : > { %v515_v4 = vmul.bf16 1009007652, %v499_v59  ;;  %v415_v6 = vrot.slane %v407_v63, %v1767_v42  ;;  %v1292_v9 = vcombine.low %v537_v57, %v538_v56  ;;  %v1293_v10 = vcombine.high %v537_v57, %v538_v56 }
  0xd1   : > { %v532_v12 = vmax.bf16 %v516_v3, %v500_v58  ;;  %v508_v14 = vadd.bf16 %v1774_v43, %v427_v5  ;;  %v682_v34 = vmax.bf16 %v1879_v18, %v1872_v8  ;;  %v566_v58 = vunpack.c.h.s8.bf16 %v550_v7 }
  0xd2   : > { %v531_v13 = vmax.bf16 %v515_v4, %v499_v59  ;;  %v507_v15 = vadd.bf16 %v1774_v43, %v415_v6  ;;  %v347_v16 = vpop.permute.xlu1 %346  ;;  %v1883_v19 = vsel %vm1822_vm6, %v1292_v9, 4048220490  ;;  %v1887_v20 = vsel %vm1854_vm7, %v1293_v10, 4048220490 }
  0xd3   : > { %v335_v17 = vpop.permute.xlu0 %334  ;;  %v524_v22 = vmul.bf16 1009007652, %v508_v14  ;;  %v355_v24 = vrot.slane %v347_v16, %v1767_v42  ;;  %v694_v26 = vmax.bf16 %v1887_v20, %v1883_v19  ;;  %vm581_vm12 = vcmp.gt.bf16.partialorder %v565_v54, 0  ;;  %v1473_v16 = vld [vmem:[#allocation2 + $0x20] sm:$0xff]  }
  0xd4   : > { %v523_v23 = vmul.bf16 1009007652, %v507_v15  ;;  %v343_v25 = vrot.slane %v335_v17, %v1767_v42  ;;  %v1286_v29 = vcombine.low %v531_v13, %v532_v12  ;;  %v1287_v37 = vcombine.high %v531_v13, %v532_v12 }
  0xd5   : > { %v540_v30 = vmax.bf16 %v524_v22, %v508_v14  ;;  %v502_v32 = vadd.bf16 %v1774_v43, %v355_v24  ;;  %695 = vmax.xlane.bf16.xlu1 %v694_v26  ;;  %vm582_vm13 = vcmp.gt.bf16.partialorder %v566_v58, 0  ;;  %v1475_v22 = vld [vmem:[#allocation2 + $0x28] sm:$0xff]   ;;  %v1477_v24 = vld [vmem:[#allocation2 + $0x30] sm:$0xff]   ;;  %v1479_v26 = vld [vmem:[#allocation2 + $0x38] sm:$0xff]  }
  0xd6   : > { %v539_v31 = vmax.bf16 %v523_v23, %v507_v15  ;;  %v501_v33 = vadd.bf16 %v1774_v43, %v343_v25  ;;  %v443_v35 = vpop.permute.xlu1 %442  ;;  %683 = vmax.xlane.bf16.xlu0 %v682_v34  ;;  %v1920_v57 = vsel %vm1893_vm8, %v1286_v29, 4048220490  ;;  %v1924_v61 = vsel %vm1897_vm9, %v1287_v37, 4048220490  ;;  %v1472_v15 = vld [vmem:[#allocation2 + $0x60] sm:$0xff]   ;;  %v1476_v23 = vld [vmem:[#allocation2 + $0x70] sm:$0xff]  }
  0xd7   : > { %v431_v36 = vpop.permute.xlu0 %430  ;;  %v518_v40 = vmul.bf16 1009007652, %v502_v32  ;;  %v451_v47 = vrot.slane %v443_v35, %v1767_v42  ;;  %v685_v5 = vmax.bf16 %v1924_v61, %v1920_v57  ;;  %1329 = vmatprep.subr.bf16.mxu0 %v1472_v15  ;;  %1389 = vmatprep.subr.bf16.mxu1 %v1472_v15  ;;  %v1478_v25 = vld [vmem:[#allocation2 + $0x78] sm:$0xff]  }
  0xd8   : > { %v517_v46 = vmul.bf16 1009007652, %v501_v33  ;;  %v439_v48 = vrot.slane %v431_v36, %v1767_v42  ;;  %v1294_v49 = vcombine.low %v539_v31, %v540_v30  ;;  %v1295_v52 = vcombine.high %v539_v31, %v540_v30  ;;  %1330 = vmatpush3.bf16.msra.mxu0 %v1473_v16  ;;  %1397 = vmatpush3.bf16.msra.mxu1 %v1473_v16 }
  0xd9   : > { %v510_v55 = vadd.bf16 %v1774_v43, %v451_v47  ;;  %v534_v59 = vmax.bf16 %v518_v40, %v502_v32  ;;  %1331 = vmatprep.subr.bf16.mxu0 %v1474_v21  ;;  %1390 = vmatprep.subr.bf16.mxu1 %v1474_v21  ;;  %v1646_v31 = vmov 3265315488  }
  0xda   : > { %v509_v56 = vadd.bf16 %v1774_v43, %v439_v48  ;;  %v1928_v42 = vsel %vm1905_vm10, %v1294_v49, 4048220490  ;;  %v1932_v60 = vsel %vm1909_vm11, %v1295_v52, 4048220490  ;;  %v533_v62 = vmax.bf16 %v517_v46, %v501_v33 }
  0xdb   : > { %v526_v43 = vmul.bf16 1009007652, %v510_v55  ;;  %v697_v0 = vmax.bf16 %v1932_v60, %v1928_v42 }
  0xdc   : > { %v525_v63 = vmul.bf16 1009007652, %v509_v56  ;;  %v1288_v6 = vcombine.low %v533_v62, %v534_v59  ;;  %v1289_v7 = vcombine.high %v533_v62, %v534_v59  ;;  %1332 = vmatpush3.bf16.msra.mxu0 %v1475_v22  ;;  %1398 = vmatpush3.bf16.msra.mxu1 %v1475_v22 }
  0xdd   : > { %v542_v3 = vmax.bf16 %v526_v43, %v510_v55  ;;  %698 = vmax.xlane.bf16.xlu1 %v697_v0  ;;  %1333 = vmatprep.subr.bf16.mxu0 %v1476_v23 }
  0xde   : > { %v541_v4 = vmax.bf16 %v525_v63, %v509_v56  ;;  %686 = vmax.xlane.bf16.xlu0 %v685_v5  ;;  %v1946_v13 = vsel %vm573_vm14, %v1288_v6, 4048220490  ;;  %v1948_v14 = vsel %vm574_vm15, %v1289_v7, 4048220490  ;;  %1391 = vmatprep.subr.bf16.mxu1 %v1476_v23 }
  0xdf   : > { %v688_v17 = vmax.bf16 %v1948_v14, %v1946_v13 }
  0xe0   : > { %v1296_v9 = vcombine.low %v541_v4, %v542_v3  ;;  %v1297_v10 = vcombine.high %v541_v4, %v542_v3  ;;  %1334 = vmatpush3.bf16.msra.mxu0 %v1477_v24  ;;  %1399 = vmatpush3.bf16.msra.mxu1 %v1477_v24 }
  0xe1   : > { %1335 = vmatprep.subr.bf16.mxu0 %v1478_v25  ;;  %1392 = vmatprep.subr.bf16.mxu1 %v1478_v25 }
  0xe2   : > { %v1940_v12 = vsel %vm581_vm12, %v1296_v9, 4048220490  ;;  %v1942_v50 = vsel %vm582_vm13, %v1297_v10, 4048220490 }
  0xe3   : > { %v700_v51 = vmax.bf16 %v1942_v50, %v1940_v12 }
  0xe4   : > { %1336 = vmatpush3.bf16.msra.mxu0 %v1479_v26  ;;  %1400 = vmatpush3.bf16.msra.mxu1 %v1479_v26 }
  0xe5   : > { %701 = vmax.xlane.bf16.xlu1 %v700_v51 }
  0xe6   : > { %689 = vmax.xlane.bf16.xlu0 %v688_v17 }
 0x15d   : > { %v693_v27 = vpop.xlane.xlu1 %692 }
 0x15e   : > { %v711_v28 = vsub.bf16 %v1830_v41, %v693_v27  ;;  %v712_v29 = vsub.bf16 %v1834_v44, %v693_v27 }
 0x15f   : > { %v681_v30 = vpop.xlane.xlu0 %680 }
 0x160   : > { %v727_v32 = vmax.bf16 %v1646_v31, %v711_v28  ;;  %v703_v33 = vsub.bf16 %v1838_v45, %v681_v30  ;;  %v704_v34 = vsub.bf16 %v1852_v53, %v681_v30  ;;  %v728_v35 = vmax.bf16 %v1646_v31, %v712_v29 }
 0x162   : > { %v760_v36 = vmul.bf16 1069105081, %v727_v32  ;;  %v719_v37 = vmax.bf16 %v1646_v31, %v703_v33  ;;  %v720_v38 = vmax.bf16 %v1646_v31, %v704_v34  ;;  %v763_v39 = vmul.bf16 1069105081, %v728_v35 }
 0x164   : > { %1480 = vpow.bf16 %v760_v36  ;;  %v736_v41 = vmul.bf16 1069105081, %v719_v37  ;;  %v739_v40 = vmul.bf16 1069105081, %v720_v38  ;;  %v1647_v36 = vmov 32  }
 0x165   : > { %1482 = vpow.bf16 %v763_v39  ;;  %1463 = vset.pattern.permute.xlu1 %v1647_v36  ;;  %1462 = vset.pattern.permute.xlu0 %v1647_v36 }
 0x166   : > { %v696_v44 = vpop.xlane.xlu1 %695  ;;  %1484 = vpow.bf16 %v736_v41 }
 0x167   : > { %v713_v46 = vsub.bf16 %v1883_v19, %v696_v44  ;;  %v714_v45 = vsub.bf16 %v1887_v20, %v696_v44  ;;  %v684_v47 = vpop.xlane.xlu0 %683  ;;  %1486 = vpow.bf16 %v739_v40 }
 0x168   : > { %v705_v49 = vsub.bf16 %v1872_v8, %v684_v47  ;;  %v706_v52 = vsub.bf16 %v1879_v18, %v684_v47 }
 0x169   : > { %v729_v53 = vmax.bf16 %v1646_v31, %v713_v46  ;;  %v730_v48 = vmax.bf16 %v1646_v31, %v714_v45 }
 0x16a   : > { %v721_v56 = vmax.bf16 %v1646_v31, %v705_v49  ;;  %v722_v58 = vmax.bf16 %v1646_v31, %v706_v52 }
 0x16b   : > { %v766_v54 = vmul.bf16 1069105081, %v729_v53  ;;  %v769_v55 = vmul.bf16 1069105081, %v730_v48 }
 0x16c   : > { %v742_v19 = vmul.bf16 1069105081, %v721_v56  ;;  %v745_v59 = vmul.bf16 1069105081, %v722_v58 }
 0x16d   : > { %1488 = vpow.bf16 %v766_v54 }
 0x16e   : > { %1490 = vpow.bf16 %v769_v55  ;;  %v699_v20 = vpop.xlane.xlu1 %698 }
 0x16f   : > { %1492 = vpow.bf16 %v742_v19  ;;  %v715_v62 = vsub.bf16 %v1928_v42, %v699_v20  ;;  %v716_v43 = vsub.bf16 %v1932_v60, %v699_v20  ;;  %v1481_v63 = vpop.eup %1480  ;;  %v687_v8 = vpop.xlane.xlu0 %686 }
 0x170   : > { %1494 = vpow.bf16 %v745_v59  ;;  %v1483_v18 = vpop.eup %1482  ;;  %v707_v2 = vsub.bf16 %v1920_v57, %v687_v8  ;;  %v708_v3 = vsub.bf16 %v1924_v61, %v687_v8 }
 0x171   : > { %v731_v0 = vmax.bf16 %v1646_v31, %v715_v62  ;;  %v732_v1 = vmax.bf16 %v1646_v31, %v716_v43  ;;  %v1485_v4 = vpop.eup %1484  ;;  %975 = vmatprep.mubr.bf16.mxu1 %v1483_v18 }
 0x172   : > { %v1487_v5 = vpop.eup %1486  ;;  %v723_v42 = vmax.bf16 %v1646_v31, %v707_v2  ;;  %v724_v60 = vmax.bf16 %v1646_v31, %v708_v3  ;;  %976 = vmatmul.mubr.bf16.vlgmr.msra.gmra.mrb[0].mxu1 %v1481_v63 }
 0x173   : > { %v772_v6 = vmul.bf16 1069105081, %v731_v0  ;;  %v775_v7 = vmul.bf16 1069105081, %v732_v1  ;;  %943 = vmatprep.mubr.bf16.mxu0 %v1487_v5 }
 0x174   : > { %v748_v9 = vmul.bf16 1069105081, %v723_v42  ;;  %v751_v10 = vmul.bf16 1069105081, %v724_v60  ;;  %944 = vmatmul.mubr.bf16.vlgmr.msra.gmra.mrb[0].mxu0 %v1485_v4 }
 0x175   : > { %1496 = vpow.bf16 %v772_v6 }
 0x176   : > { %1498 = vpow.bf16 %v775_v7  ;;  %v702_v11 = vpop.xlane.xlu1 %701 }
 0x177   : > { %1500 = vpow.bf16 %v748_v9  ;;  %v717_v57 = vsub.bf16 %v1940_v12, %v702_v11  ;;  %v718_v61 = vsub.bf16 %v1942_v50, %v702_v11  ;;  %v690_v15 = vpop.xlane.xlu0 %689 }
 0x178   : > { %v1489_v51 = vpop.eup %1488  ;;  %1502 = vpow.bf16 %v751_v10  ;;  %v709_v22 = vsub.bf16 %v1946_v13, %v690_v15  ;;  %v710_v23 = vsub.bf16 %v1948_v14, %v690_v15 }
 0x179   : > { %v1491_v16 = vpop.eup %1490  ;;  %v733_v17 = vmax.bf16 %v1646_v31, %v717_v57  ;;  %v734_v21 = vmax.bf16 %v1646_v31, %v718_v61 }
 0x17a   : > { %v1493_v24 = vpop.eup %1492  ;;  %983 = vmatprep.mubr.bf16.mxu1 %v1491_v16  ;;  %v725_v12 = vmax.bf16 %v1646_v31, %v709_v22  ;;  %v726_v50 = vmax.bf16 %v1646_v31, %v710_v23 }
 0x17b   : > { %v1495_v25 = vpop.eup %1494  ;;  %v778_v26 = vmul.bf16 1069105081, %v733_v17  ;;  %v781_v27 = vmul.bf16 1069105081, %v734_v21  ;;  %984 = vmatmul.mubr.bf16.gmra.mrb[4].mxu1 %v1489_v51 }
 0x17c   : > { %951 = vmatprep.mubr.bf16.mxu0 %v1495_v25  ;;  %v754_v28 = vmul.bf16 1069105081, %v725_v12  ;;  %v757_v29 = vmul.bf16 1069105081, %v726_v50 }
 0x17d   : > { %1504 = vpow.bf16 %v778_v26  ;;  %952 = vmatmul.mubr.bf16.gmra.mrb[4].mxu0 %v1493_v24 }
 0x17e   : > { %1506 = vpow.bf16 %v781_v27 }
 0x17f   : > { %1508 = vpow.bf16 %v754_v28 }
 0x180   : > { %v1497_v13 = vpop.eup %1496  ;;  %1510 = vpow.bf16 %v757_v29 }
 0x181   : > { %v1499_v14 = vpop.eup %1498 }
 0x182   : > { %v1501_v30 = vpop.eup %1500  ;;  %991 = vmatprep.mubr.bf16.mxu1 %v1499_v14 }
 0x183   : > { %v1503_v32 = vpop.eup %1502  ;;  %992 = vmatmul.mubr.bf16.gmra.mrb[8].mxu1 %v1497_v13 }
 0x184   : > { %959 = vmatprep.mubr.bf16.mxu0 %v1503_v32 }
 0x185   : > { %960 = vmatmul.mubr.bf16.gmra.mrb[8].mxu0 %v1501_v30 }
 0x188   : > { %v1505_v33 = vpop.eup %1504 }
 0x189   : > { %v1507_v34 = vpop.eup %1506 }
 0x18a   : > { %v1509_v31 = vpop.eup %1508  ;;  %999 = vmatprep.mubr.bf16.mxu1 %v1507_v34 }
 0x18b   : > { %v1511_v35 = vpop.eup %1510  ;;  %1000 = vmatmul.mubr.bf16.gmra.mrb[12].mxu1 %v1505_v33 }
 0x18c   : > { %967 = vmatprep.mubr.bf16.mxu0 %v1511_v35 }
 0x18d   : > { %968 = vmatmul.mubr.bf16.gmra.mrb[12].mxu0 %v1509_v31 }
 0x245   : > { %v1361_v37 = vpop.f32.mrb[0].mxu1 }
 0x246   : > { %v1362_v38 = vpop.f32.mrb[1].mxu1 }
 0x247   : > { %v1337_v39 = vpop.f32.mrb[0].mxu0  ;;  %v1984_v41 = vadd.f32 %v1362_v38, %v1361_v37  ;;  %v1364_v40 = vpop.f32.mrb[2].mxu1 }
 0x248   : > { %v1338_v44 = vpop.f32.mrb[1].mxu0  ;;  %v1365_v46 = vpop.f32.mrb[3].mxu1 }
 0x249   : > { %v1986_v45 = vadd.f32 %v1338_v44, %v1337_v39  ;;  %v1016_v47 = vmax.f32 %v1984_v41, 1e-30  ;;  %v1340_v53 = vpop.f32.mrb[2].mxu0  ;;  %v1989_v48 = vadd.f32 %v1365_v46, %v1364_v40 }
 0x24a   : > { %v1341_v49 = vpop.f32.mrb[3].mxu0 }
 0x24b   : > { %v1008_v52 = vmax.f32 %v1986_v45, 1e-30  ;;  %1512 = vrcp.f32 %v1016_v47  ;;  %v1992_v54 = vadd.f32 %v1341_v49, %v1340_v53  ;;  %v1017_v56 = vmax.f32 %v1989_v48, 1e-30 }
 0x24d   : > { %1514 = vrcp.f32 %v1008_v52  ;;  %v1009_v55 = vmax.f32 %v1992_v54, 1e-30 }
 0x24e   : > { %v1367_v58 = vpop.f32.mrb[4].mxu1 }
 0x24f   : > { %v1368_v19 = vpop.f32.mrb[5].mxu1  ;;  %1516 = vrcp.f32 %v1009_v55 }
 0x250   : > { %v1343_v59 = vpop.f32.mrb[4].mxu0  ;;  %v1996_v20 = vadd.f32 %v1368_v19, %v1367_v58  ;;  %v1370_v62 = vpop.f32.mrb[6].mxu1  ;;  %1518 = vrcp.f32 %v1017_v56 }
 0x251   : > { %v1344_v43 = vpop.f32.mrb[5].mxu0  ;;  %v1371_v63 = vpop.f32.mrb[7].mxu1 }
 0x252   : > { %v1998_v8 = vadd.f32 %v1344_v43, %v1343_v59  ;;  %v1346_v18 = vpop.f32.mrb[6].mxu0  ;;  %v2000_v0 = vadd.f32 %v1371_v63, %v1370_v62  ;;  %v1018_v6 = vmax.f32 %v1996_v20, 1e-30 }
 0x253   : > { %v1347_v1 = vpop.f32.mrb[7].mxu0 }
 0x254   : > { %v1010_v2 = vmax.f32 %v1998_v8, 1e-30  ;;  %v2003_v3 = vadd.f32 %v1347_v1, %v1346_v18  ;;  %v1019_v4 = vmax.f32 %v2000_v0, 1e-30 }
 0x255   : > { %v1513_v5 = vpop.eup %1512 }
 0x256   : > { %1520 = vrcp.f32 %v1010_v2  ;;  %v1373_v7 = vpop.f32.mrb[8].mxu1  ;;  %1082 = vperm.xlu1 %1463, %v1513_v5   ;;  %v1011_v15 = vmax.f32 %v2003_v3, 1e-30 }
 0x257   : > { %1522 = vrcp.f32 %v1019_v4  ;;  %v1374_v42 = vpop.f32.mrb[9].mxu1  ;;  %v1515_v60 = vpop.eup %1514 }
 0x258   : > { %v1349_v9 = vpop.f32.mrb[8].mxu0  ;;  %v2007_v10 = vadd.f32 %v1374_v42, %v1373_v7  ;;  %v1376_v11 = vpop.f32.mrb[10].mxu1  ;;  %1042 = vperm.xlu0 %1462, %v1515_v60   ;;  %1524 = vrcp.f32 %v1018_v6 }
 0x259   : > { %v1350_v57 = vpop.f32.mrb[9].mxu0  ;;  %v1377_v61 = vpop.f32.mrb[11].mxu1  ;;  %1526 = vrcp.f32 %v1011_v15 }
 0x25a   : > { %v1517_v51 = vpop.eup %1516  ;;  %v2010_v16 = vadd.f32 %v1350_v57, %v1349_v9  ;;  %v1352_v17 = vpop.f32.mrb[10].mxu0  ;;  %v2012_v21 = vadd.f32 %v1377_v61, %v1376_v11  ;;  %v1020_v33 = vmax.f32 %v2007_v10, 1e-30 }
 0x25b   : > { %v1353_v22 = vpop.f32.mrb[11].mxu0  ;;  %1047 = vperm.xlu1 %1463, %v1517_v51   ;;  %v1519_v23 = vpop.eup %1518 }
 0x25c   : > { %v2014_v24 = vadd.f32 %v1353_v22, %v1352_v17  ;;  %v1021_v25 = vmax.f32 %v2012_v21, 1e-30  ;;  %1087 = vperm.xlu0 %1462, %v1519_v23   ;;  %v1012_v26 = vmax.f32 %v2010_v16, 1e-30 }
 0x25e   : > { %v1379_v27 = vpop.f32.mrb[12].mxu1  ;;  %1528 = vrcp.f32 %v1021_v25  ;;  %v1013_v40 = vmax.f32 %v2014_v24, 1e-30 }
 0x25f   : > { %v1380_v12 = vpop.f32.mrb[13].mxu1  ;;  %1530 = vrcp.f32 %v1012_v26 }
 0x260   : > { %v1521_v50 = vpop.eup %1520  ;;  %v1355_v28 = vpop.f32.mrb[12].mxu0  ;;  %v2018_v29 = vadd.f32 %v1380_v12, %v1379_v27  ;;  %1532 = vrcp.f32 %v1020_v33 }
 0x261   : > { %v1382_v13 = vpop.f32.mrb[14].mxu1  ;;  %v1523_v14 = vpop.eup %1522  ;;  %1052 = vperm.xlu1 %1463, %v1521_v50  }
 0x262   : > { %v1356_v30 = vpop.f32.mrb[13].mxu0  ;;  %v1383_v32 = vpop.f32.mrb[15].mxu1  ;;  %1097 = vperm.xlu0 %1462, %v1523_v14   ;;  %v1022_v56 = vmax.f32 %v2018_v29, 1e-30 }
 0x263   : > { %v2021_v34 = vadd.f32 %v1356_v30, %v1355_v28  ;;  %v1358_v31 = vpop.f32.mrb[14].mxu0  ;;  %v2023_v35 = vadd.f32 %v1383_v32, %v1382_v13  ;;  %v1525_v37 = vpop.eup %1524 }
 0x264   : > { %v1359_v36 = vpop.f32.mrb[15].mxu0  ;;  %v1527_v44 = vpop.eup %1526 }
 0x265   : > { %v1023_v38 = vmax.f32 %v2023_v35, 1e-30  ;;  %v2026_v39 = vadd.f32 %v1359_v36, %v1358_v31  ;;  %1092 = vperm.xlu1 %1463, %v1525_v37   ;;  %v1014_v47 = vmax.f32 %v2021_v34, 1e-30 }
 0x267   : > { %1534 = vrcp.f32 %v1023_v38  ;;  %v1015_v49 = vmax.f32 %v2026_v39, 1e-30 }
 0x268   : > { %v1529_v46 = vpop.eup %1528  ;;  %1536 = vrcp.f32 %v1013_v40 }
 0x269   : > { %1057 = vperm.xlu1 %1463, %v1527_v44   ;;  %1107 = vperm.xlu0 %1462, %v1529_v46   ;;  %v1531_v53 = vpop.eup %1530  ;;  %1538 = vrcp.f32 %v1014_v47 }
 0x26a   : > { %v1533_v52 = vpop.eup %1532  ;;  %1540 = vrcp.f32 %v1015_v49 }
 0x26b   : > { %1542 = vrcp.f32 %v1022_v56 }
 0x26d   : > { %1062 = vperm.xlu1 %1463, %v1531_v53  }
 0x271   : > { %v1535_v55 = vpop.eup %1534  ;;  %1102 = vperm.xlu1 %1463, %v1533_v52  }
 0x272   : > { %1117 = vperm.xlu0 %1462, %v1535_v55   ;;  %v1537_v58 = vpop.eup %1536 }
 0x273   : > { %v1539_v19 = vpop.eup %1538 }
 0x274   : > { %v1541_v59 = vpop.eup %1540 }
 0x275   : > { %1067 = vperm.xlu1 %1463, %v1537_v58   ;;  %v1543_v62 = vpop.eup %1542 }
 0x279   : > { %1072 = vperm.xlu1 %1463, %v1539_v19  }
 0x27d   : > { %1077 = vperm.xlu1 %1463, %v1541_v59  }
 0x281   : > { %1112 = vperm.xlu1 %1463, %v1543_v62  }
 0x2d5   : > { %v1083_v43 = vpop.permute.xlu1 %1082 }
 0x2d6   : > { %v1128_v63 = vmul.f32 %v1984_v41, %v1083_v43 }
 0x2d7   : > { %v1043_v18 = vpop.permute.xlu0 %1042 }
 0x2d8   : > { %v1144_v1 = vmax.f32 %v1128_v63, 0.0  ;;  %v1120_v2 = vmul.f32 %v1986_v45, %v1043_v18 }
 0x2da   : > { %v1048_v4 = vpop.permute.xlu1 %1047  ;;  %1160 = vst [vmem:[%s2037_s14 + $0x40] sm:$0xff] %v1144_v1  ;;  %v1136_v5 = vmax.f32 %v1120_v2, 0.0 }
 0x2db   : > { %v1121_v6 = vmul.f32 %v1992_v54, %v1048_v4  ;;  %v1088_v7 = vpop.permute.xlu0 %1087 }
 0x2dc   : > { %1152 = vst [vmem:[%s2037_s14] sm:$0xff] %v1136_v5  ;;  %v1129_v42 = vmul.f32 %v1989_v48, %v1088_v7 }
 0x2dd   : > { %v1137_v41 = vmax.f32 %v1121_v6, 0.0 }
 0x2de   : > { %v1145_v45 = vmax.f32 %v1129_v42, 0.0 }
 0x2df   : > { %1153 = vst [vmem:[%s2037_s14 + $0x8] sm:$0xff] %v1137_v41 }
 0x2e0   : > { %v1053_v60 = vpop.permute.xlu1 %1052  ;;  %1161 = vst [vmem:[%s2037_s14 + $0x48] sm:$0xff] %v1145_v45 }
 0x2e1   : > { %v1122_v9 = vmul.f32 %v1998_v8, %v1053_v60  ;;  %v1098_v11 = vpop.permute.xlu0 %1097 }
 0x2e2   : > { %v1131_v57 = vmul.f32 %v2000_v0, %v1098_v11 }
 0x2e3   : > { %v1138_v61 = vmax.f32 %v1122_v9, 0.0 }
 0x2e4   : > { %v1147_v51 = vmax.f32 %v1131_v57, 0.0  ;;  %v1093_v54 = vpop.permute.xlu1 %1092 }
 0x2e5   : > { %1154 = vst [vmem:[%s2037_s14 + $0x10] sm:$0xff] %v1138_v61  ;;  %v1130_v15 = vmul.f32 %v1996_v20, %v1093_v54 }
 0x2e6   : > { %1163 = vst [vmem:[%s2037_s14 + $0x58] sm:$0xff] %v1147_v51 }
 0x2e7   : > { %v1146_v48 = vmax.f32 %v1130_v15, 0.0 }
 0x2e8   : > { %v1058_v17 = vpop.permute.xlu1 %1057  ;;  %v1108_v23 = vpop.permute.xlu0 %1107 }
 0x2e9   : > { %1162 = vst [vmem:[%s2037_s14 + $0x50] sm:$0xff] %v1146_v48  ;;  %v1123_v22 = vmul.f32 %v2003_v3, %v1058_v17  ;;  %v1133_v8 = vmul.f32 %v2012_v21, %v1108_v23 }
 0x2eb   : > { %v1139_v0 = vmax.f32 %v1123_v22, 0.0  ;;  %v1149_v25 = vmax.f32 %v1133_v8, 0.0 }
 0x2ec   : > { %v1063_v26 = vpop.permute.xlu1 %1062 }
 0x2ed   : > { %1155 = vst [vmem:[%s2037_s14 + $0x18] sm:$0xff] %v1139_v0  ;;  %v1124_v27 = vmul.f32 %v2010_v16, %v1063_v26  ;;  %1165 = vst [vmem:[%s2037_s14 + $0x68] sm:$0xff] %v1149_v25 }
 0x2ef   : > { %v1140_v20 = vmax.f32 %v1124_v27, 0.0 }
 0x2f0   : > { %v1103_v12 = vpop.permute.xlu1 %1102 }
 0x2f1   : > { %1156 = vst [vmem:[%s2037_s14 + $0x20] sm:$0xff] %v1140_v20  ;;  %v1132_v50 = vmul.f32 %v2007_v10, %v1103_v12  ;;  %v1118_v3 = vpop.permute.xlu0 %1117 }
 0x2f2   : > { %v1135_v28 = vmul.f32 %v2023_v35, %v1118_v3 }
 0x2f3   : > { %v1148_v21 = vmax.f32 %v1132_v50, 0.0 }
 0x2f4   : > { %v1151_v13 = vmax.f32 %v1135_v28, 0.0  ;;  %v1068_v14 = vpop.permute.xlu1 %1067 }
 0x2f5   : > { %1164 = vst [vmem:[%s2037_s14 + $0x60] sm:$0xff] %v1148_v21  ;;  %v1125_v16 = vmul.f32 %v2014_v24, %v1068_v14 }
 0x2f6   : > { %1167 = vst [vmem:[%s2037_s14 + $0x78] sm:$0xff] %v1151_v13 }
 0x2f7   : > { %v1141_v30 = vmax.f32 %v1125_v16, 0.0 }
 0x2f8   : > { %v1073_v32 = vpop.permute.xlu1 %1072 }
 0x2f9   : > { %1157 = vst [vmem:[%s2037_s14 + $0x28] sm:$0xff] %v1141_v30  ;;  %v1126_v10 = vmul.f32 %v2021_v34, %v1073_v32 }
 0x2fb   : > { %v1142_v33 = vmax.f32 %v1126_v10, 0.0 }
 0x2fc   : > { %v1078_v31 = vpop.permute.xlu1 %1077 }
 0x2fd   : > { %1158 = vst [vmem:[%s2037_s14 + $0x30] sm:$0xff] %v1142_v33  ;;  %v1127_v35 = vmul.f32 %v2026_v39, %v1078_v31 }
 0x2ff   : > { %v1143_v36 = vmax.f32 %v1127_v35, 0.0 }
 0x300   : > { %v1113_v37 = vpop.permute.xlu1 %1112 }
 0x301   : > { %1159 = vst [vmem:[%s2037_s14 + $0x38] sm:$0xff] %v1143_v36  ;;  %v1134_v24 = vmul.f32 %v2018_v29, %v1113_v37 }
 0x303   : > { %v1150_v34 = vmax.f32 %v1134_v24, 0.0 }
 0x305   : > { %1166 = vst [vmem:[%s2037_s14 + $0x70] sm:$0xff] %v1150_v34 }
 0x306   : > { %1585 = shalt.err (!%p1582_p8)
}
 0x307   : > { %s1586_s7 = scalar_lea.hbm %s2073_s30, 2048  ;;  %s1590_s10 = scalar_lea.hbm %s2125_s4, 4096 }
 0x308   : > { %p1587_p11 = scmp.ne.s32.totalorder %s2073_s30, %s1586_s7  ;;  %p1591_p0 = scmp.lt.u32.totalorder %s2073_s30, %s2125_s4 }
 0x309   : > { %p1592_p5 = scmp.lt.u32.totalorder %s1590_s10, %s1586_s7  ;;  %p1594_p9 = scmp.lt.u32.totalorder %s1586_s7, %s2073_s30 }
 0x30a   : > { %p1588_p13 = pnand %p1587_p11, %p2160_p10 }
 0x30b   : > { %p1593_p6 = por %p1592_p5, %p1591_p0 }
 0x30c   : > { %p1589_p1 = pneg %p1588_p13 }
 0x30d   : > { %p1595_p12 = por %p1594_p9, %p1593_p6 }
 0x30f   : > { %p1596_p2 = pnand %p1595_p12, %p1589_p1 }
 0x311   : > { %1599 = shalt.err (!%p1596_p2)
}
 0x312   : > { %s1649_s13 = smov 128   ;;  %s1650_s14 = smov 8  }
 0x313   : > { %1405 = dma.vmem_to_hbm [thread:$0]  (%p2160_p10), %s2075_s22, 2048, %s2073_s30, %s2080_s5, %s1649_s13, %s1649_s13, %s1650_s14  }
 0x314 PF: > { %p1417_p3 = scmp.ge.s32.totalorder %s1638_s18, 2  ;;  %s1197_s20 = sand.u32 1, %s1626_s15  }
 0x315   : > { %p2161_p4 = scmp.ne.s32.totalorder %s2130_s26, 0  ;;  %s1198_s23 = scalar_lea.sflag [#allocation4], %s1197_s20 }
 0x317   : > { %p1412_p7 = pnand %p1417_p3, %p2161_p4 }
 0x319   : > { %1621 = dma.done.wait (!%p1412_p7), %s1198_s23, 2048  }
 0x31a   : > { %1623 = vsyncadd (!%p1412_p7), %s1198_s23, 4294965248  ;;  %p15_p8 = scmp.ge.s32.totalorder %s1701_s21, 4   ;;  %s2162_s15 = smov %s1630_s16 }
 0x31b   : > { %s2163_s16 = smov %s1634_s17  ;;  %s2164_s17 = smov %s1712_s24 }
 0x31c   : > { %s2165_s18 = smov %s1701_s21  ;;  %17 = sbr.rel (!%p15_p8) target bundleno = 4 (0x4), region = 79 }
 0x323   :  { %1203 = vsyncpa [#allocation3], 1 }
 0x324   :  { %1205 = vsyncpa [#allocation3 + $0x1], 1 }
 0x325   :  { %1206 = vsyncpa [#allocation4], 1 }
 0x326   :  { %1208 = vsyncpa [#allocation4 + $0x1], 1 }

</bundles_post_ra>
